<compile_context>
chip_gen: v6e
topology: v6e:2x2x1
jax: 0.10.0
libtpu: 0.0.40
codegen_flags: <defaults>
</compile_context>

<pallas_src>
import functools

import jax
import jax.numpy as jnp
from jax import lax
from jax.experimental import pallas as pl
from jax.experimental.pallas import tpu as pltpu

_MIN_KERNEL_ELEMS = 8 * 128   # below this, one fused XLA op beats any kernel launch
_MAX_LANES = 4096
_MIN_UTIL = 0.70              # min lane utilization before falling back to a pad copy


@functools.lru_cache(maxsize=None)
def _tpu_config():
    """(pipeline VMEM budget bytes, is_multi_tensorcore) for the attached TPU."""
    try:
        kind = jax.devices()[0].device_kind.lower()
    except Exception:  # defensive: fall back to conservative v5e numbers
        kind = ""
    is_multi_tc = "v7" in kind
    newer = is_multi_tc or "v6" in kind
    # Stay well under the scoped-VMEM defaults (16 MiB v5e, 32 MiB v6e/v7x) so the
    # defaults suffice (no vmem_limit_bytes) and Mosaic internal scratch has headroom.
    budget = (24 if newer else 12) * 1024 * 1024
    return budget, is_multi_tc


def _pick_lanes(total):
    """Pick a last-dim size that divides `total` exactly (no pad copy needed).

    Preference: largest multiple-of-128 divisor <= 1024, then any multiple-of-128
    divisor <= _MAX_LANES, then the divisor in [96, _MAX_LANES] with the best padded
    vreg-lane utilization. Returns (lanes, utilization) or (None, 0.0).
    """
    for d in range(1024, 127, -128):
        if total % d == 0:
            return d, 1.0
    for d in range(_MAX_LANES, 1024, -128):
        if total % d == 0:
            return d, 1.0
    best_lanes, best_util = None, 0.0
    for d in range(96, min(_MAX_LANES, total) + 1):
        if total % d:
            continue
        util = d / (((d + 127) // 128) * 128)
        if util > best_util + 1e-9 or (abs(util - best_util) <= 1e-9 and d > (best_lanes or 0)):
            best_lanes, best_util = d, util
    return best_lanes, best_util


def _make_kernel(rows, tile_m, blocks_per_core, needs_mask):
    def kernel(pred_ref, targ_ref, out_ref, acc_ref):
        c = pl.program_id(0)   # core-split axis
        i = pl.program_id(1)   # reduction axis ("arbitrary")

        @pl.when(i == 0)
        def _init():
            acc_ref[...] = jnp.zeros_like(acc_ref)

        # TODO(synk): complex inputs would need |.|^2 via conj; real dtypes only here
        # (the wrapper routes complex inputs to a pure-jnp path).
        d = pred_ref[...].astype(jnp.float32) - targ_ref[...].astype(jnp.float32)
        sq = d * d

        if needs_mask:
            gb = c * blocks_per_core + i        # logical (unclamped) block index
            valid = rows - gb * tile_m          # number of valid rows in this block

            @pl.when(valid >= tile_m)           # interior block: bare VPU accumulate
            def _full():
                acc_ref[...] += sq

            @pl.when(jnp.logical_and(valid > 0, valid < tile_m))  # ragged tail block
            def _tail():
                row_idx = lax.broadcasted_iota(jnp.int32, sq.shape, 0)
                acc_ref[...] += jnp.where(row_idx < valid, sq, 0.0)

            # valid <= 0: duplicated (clamped) block on an odd 2-core split -> skip.
        else:
            acc_ref[...] += sq

        @pl.when(i == blocks_per_core - 1)
        def _finalize():
            # Single cross-lane/sublane XLU reduce per core; lane-dense full-block store.
            out_ref[...] = jnp.full(out_ref.shape, jnp.sum(acc_ref[...]), jnp.float32)

    return kernel


@functools.partial(jax.jit, static_argnames=("dim", "block_budget_bytes", "force_num_cores"))
def mse_pallas(pred, target, dim=(0, 1), *, block_budget_bytes=None, force_num_cores=None):
    """MSE module semantics: sum(|pred - target|^2) / prod(pred.shape[d] for d in dim)."""
    assert pred.shape == target.shape, (pred.shape, target.shape)
    n = 1
    for d in dim:
        n *= pred.shape[d]

    # Complex inputs: |.|^2 needs a conjugate; keep a correct pure-jnp path.
    if (jnp.issubdtype(pred.dtype, jnp.complexfloating)
            or jnp.issubdtype(target.dtype, jnp.complexfloating)):
        diff = pred - target
        return (jnp.sum(jnp.abs(diff) ** 2) / jnp.float32(n)).astype(jnp.float32)

    flat_p = pred.reshape(-1)    # free for contiguous inputs, keeps native dtype
    flat_t = target.reshape(-1)
    total = flat_p.size

    # Tiny inputs: launch + grid overhead dominates; one fused XLA op wins.
    if total < _MIN_KERNEL_ELEMS:
        diff = flat_p.astype(jnp.float32) - flat_t.astype(jnp.float32)
        return (jnp.sum(diff * diff) / jnp.float32(n)).astype(jnp.float32)

    lanes, util = _pick_lanes(total)
    if lanes is None or util < _MIN_UTIL:
        # TODO(synk): degenerate totals (e.g. large primes) still take a one-off pad copy;
        # a manual-DMA 1-D kernel could remove this last copy too.
        pad = (-total) % 128
        flat_p = jnp.pad(flat_p, (0, pad))   # both zero-padded -> diff contributes 0
        flat_t = jnp.pad(flat_t, (0, pad))
        total += pad
        lanes = 128
        for cand in (1024, 512, 256, 128):
            if total % cand == 0:
                lanes = cand
                break

    rows = total // lanes
    p2 = flat_p.reshape(rows, lanes)
    t2 = flat_t.reshape(rows, lanes)

    budget, is_multi_tc = _tpu_config()
    if block_budget_bytes is not None:
        budget = block_budget_bytes

    # Per-row VMEM cost: 2 pipeline buffers per input (native dtype) + the f32 accumulator.
    per_row_bytes = lanes * (2 * (p2.dtype.itemsize + t2.dtype.itemsize) + 4)
    tile_m_cap = max(8, (budget // per_row_bytes) // 8 * 8)
    tile_m = rows if rows <= tile_m_cap else tile_m_cap

    nblocks = -(-rows // tile_m)
    if force_num_cores is not None:
        num_cores = max(1, int(force_num_cores))
    else:
        # Only split across TensorCores on multi-TC chips (v7x); on 1-TC v5e/v6e the split
        # buys nothing and an odd block count would cost a duplicate HBM read.
        num_cores = 2 if (is_multi_tc and nblocks >= 2) else 1
    blocks_per_core = -(-nblocks // num_cores)
    clamp_needed = num_cores * blocks_per_core > nblocks
    needs_mask = (rows % tile_m != 0) or clamp_needed

    def in_index_map(c, i):
        gb = c * blocks_per_core + i
        if clamp_needed:
            gb = jnp.minimum(gb, nblocks - 1)   # clamp: never issue an OOB DMA
        return (gb, 0)

    kernel = _make_kernel(rows, tile_m, blocks_per_core, needs_mask)

    if num_cores > 1:
        core_sem = getattr(pltpu, "CORE_PARALLEL", "parallel") if is_multi_tc else "parallel"
    else:
        core_sem = "arbitrary"

    # NOTE: if an xprof trace ever shows exposed DMA at step boundaries, the two input
    # BlockSpecs can take pipeline_mode=pl.Buffered(3) (VMEM budget above leaves room).
    partials = pl.pallas_call(
        kernel,
        out_shape=jax.ShapeDtypeStruct((num_cores, 8, 128), jnp.float32),
        grid_spec=pltpu.PrefetchScalarGridSpec(
            num_scalar_prefetch=0,
            grid=(num_cores, blocks_per_core),
            in_specs=[
                pl.BlockSpec((tile_m, lanes), in_index_map),
                pl.BlockSpec((tile_m, lanes), in_index_map),
            ],
            out_specs=pl.BlockSpec((1, 8, 128), lambda c, i: (c, 0, 0)),
            scratch_shapes=[pltpu.VMEM((tile_m, lanes), jnp.float32)],
        ),
        compiler_params=pltpu.CompilerParams(
            dimension_semantics=(core_sem, "arbitrary"),
        ),
    )(p2, t2)

    sumsq = jnp.sum(partials[:, 0, 0])
    return (sumsq / jnp.float32(n)).astype(jnp.float32)


if __name__ == "__main__":
    key = jax.random.PRNGKey(0)
    k = jax.random.split(key, 8)

    # 1) Small NCHW shape consistent with the module's image-regression use (128-aligned).
    pred = jax.random.normal(k[0], (2, 4, 16, 16), dtype=jnp.float32)
    target = jax.random.normal(k[1], (2, 4, 16, 16), dtype=jnp.float32)
    out = jax.block_until_ready(mse_pallas(pred, target, dim=(0, 1)))
    ref = jnp.sum(jnp.abs(pred - target) ** 2) / (2 * 4)
    assert jnp.allclose(out, ref, rtol=1e-5, atol=1e-5), (out, ref)

    # 2) Ragged (non-128-multiple) total: exercises the copy-free divisor layout path.
    pred2 = jax.random.normal(k[2], (3, 5, 24, 40), dtype=jnp.float32)
    target2 = jax.random.normal(k[3], (3, 5, 24, 40), dtype=jnp.float32)
    out2 = jax.block_until_ready(mse_pallas(pred2, target2, dim=(0, 1)))
    ref2 = jnp.sum(jnp.abs(pred2 - target2) ** 2) / (3 * 5)
    assert jnp.allclose(out2, ref2, rtol=1e-5, atol=1e-5), (out2, ref2)

    # 3) bf16 + multi-block + ragged tail rows + forced 2-core split (tiny budget forces
    #    several grid steps so the pipelined/masked accumulate paths are exercised).
    pred3 = jax.random.normal(k[4], (2, 4, 48, 80), dtype=jnp.bfloat16)
    target3 = jax.random.normal(k[5], (2, 4, 48, 80), dtype=jnp.bfloat16)
    out3 = jax.block_until_ready(
        mse_pallas(pred3, target3, dim=(0, 1),
                   block_budget_bytes=96 * 1024, force_num_cores=2))
    d3 = pred3.astype(jnp.float32) - target3.astype(jnp.float32)
    ref3 = jnp.sum(d3 * d3) / (2 * 4)
    assert jnp.allclose(out3, ref3, rtol=1e-4, atol=1e-4), (out3, ref3)

    # 4) Odd block count with a 2-core split: exercises the clamped-duplicate skip path.
    pred4 = jax.random.normal(k[6], (2, 4, 48, 64), dtype=jnp.float32)
    target4 = jax.random.normal(k[7], (2, 4, 48, 64), dtype=jnp.float32)
    out4 = jax.block_until_ready(
        mse_pallas(pred4, target4, dim=(0, 1),
                   block_budget_bytes=96 * 1024, force_num_cores=2))
    ref4 = jnp.sum(jnp.abs(pred4 - target4) ** 2) / (2 * 4)
    assert jnp.allclose(out4, ref4, rtol=1e-5, atol=1e-5), (out4, ref4)

    print("KERNEL_OK")
</pallas_src>

<mosaic_0001>
module attributes {stable_mosaic.version = 11 : i64} {
  func.func @kernel(%arg0: i32, %arg1: i32, %arg2: memref<2x1024xf32, #tpu.memory_space<vmem>>, %arg3: memref<2x1024xf32, #tpu.memory_space<vmem>>, %arg4: memref<1x8x128xf32, #tpu.memory_space<vmem>>, %arg5: memref<2x1024xf32, #tpu.memory_space<vmem>>) attributes {dimension_semantics = [#tpu.dimension_semantics<arbitrary>, #tpu.dimension_semantics<arbitrary>], iteration_bounds = array<i64: 1, 1>, scalar_prefetch = 0 : i64, scratch_operands = 1 : i64, tpu.core_type = #tpu.core_type<tc>, window_params = [{transform_indices = @transform_0, window_bounds = array<i64: 2, 1024>}, {transform_indices = @transform_1, window_bounds = array<i64: 2, 1024>}, {transform_indices = @transform_2, window_bounds = array<i64: 1, 8, 128>}]} {
    %c0_i32 = arith.constant 0 : i32
    %0 = arith.cmpi eq, %arg1, %c0_i32 : i32
    %1 = arith.extui %0 : i1 to i32
    %c0_i32_0 = arith.constant 0 : i32
    %2 = arith.cmpi ne, %1, %c0_i32_0 : i32
    scf.if %2 {
      %cst = arith.constant 0.000000e+00 : f32
      %13 = vector.broadcast %cst : f32 to vector<2x1024xf32>
      %c0_10 = arith.constant 0 : index
      %c0_11 = arith.constant 0 : index
      %14 = vector.load %arg5[%c0_10, %c0_11] : memref<2x1024xf32, #tpu.memory_space<vmem>>, vector<2x1024xf32>
      tpu.vector_store %arg5[%c0_10, %c0_11], %13 {strides = array<i32>} : memref<2x1024xf32, #tpu.memory_space<vmem>>, vector<2x1024xf32>,
    } else {
    }
    %c0 = arith.constant 0 : index
    %c0_1 = arith.constant 0 : index
    %3 = vector.load %arg2[%c0, %c0_1] : memref<2x1024xf32, #tpu.memory_space<vmem>>, vector<2x1024xf32>
    %c0_2 = arith.constant 0 : index
    %c0_3 = arith.constant 0 : index
    %4 = vector.load %arg3[%c0_2, %c0_3] : memref<2x1024xf32, #tpu.memory_space<vmem>>, vector<2x1024xf32>
    %5 = arith.subf %3, %4 : vector<2x1024xf32>
    %6 = arith.mulf %5, %5 : vector<2x1024xf32>
    %c0_4 = arith.constant 0 : index
    %c0_5 = arith.constant 0 : index
    %7 = vector.load %arg5[%c0_4, %c0_5] : memref<2x1024xf32, #tpu.memory_space<vmem>>, vector<2x1024xf32>
    %8 = arith.addf %7, %6 : vector<2x1024xf32>
    %c0_6 = arith.constant 0 : index
    %c0_7 = arith.constant 0 : index
    %9 = vector.load %arg5[%c0_6, %c0_7] : memref<2x1024xf32, #tpu.memory_space<vmem>>, vector<2x1024xf32>
    tpu.vector_store %arg5[%c0_6, %c0_7], %8 {strides = array<i32>} : memref<2x1024xf32, #tpu.memory_space<vmem>>, vector<2x1024xf32>,
    %c0_i32_8 = arith.constant 0 : i32
    %10 = arith.cmpi eq, %arg1, %c0_i32_8 : i32
    %11 = arith.extui %10 : i1 to i32
    %c0_i32_9 = arith.constant 0 : i32
    %12 = arith.cmpi ne, %11, %c0_i32_9 : i32
    scf.if %12 {
      %c0_10 = arith.constant 0 : index
      %c0_11 = arith.constant 0 : index
      %13 = vector.load %arg5[%c0_10, %c0_11] : memref<2x1024xf32, #tpu.memory_space<vmem>>, vector<2x1024xf32>
      %14 = vector.shape_cast %13 : vector<2x1024xf32> to vector<1x2x1024xf32>
      %cst = arith.constant dense<0.000000e+00> : vector<1xf32>
      %15 = vector.multi_reduction <add>, %14, %cst [1, 2] : vector<1x2x1024xf32> to vector<1xf32>
      %16 = vector.shape_cast %15 : vector<1xf32> to vector<1x1x1xf32>
      %17 = vector.extract %16[0, 0, 0] : f32 from vector<1x1x1xf32>
      %18 = vector.broadcast %17 : f32 to vector<1x8x128xf32>
      %c0_12 = arith.constant 0 : index
      %c0_13 = arith.constant 0 : index
      %c0_14 = arith.constant 0 : index
      %19 = vector.load %arg4[%c0_12, %c0_13, %c0_14] : memref<1x8x128xf32, #tpu.memory_space<vmem>>, vector<1x8x128xf32>
      tpu.vector_store %arg4[%c0_12, %c0_13, %c0_14], %18 {strides = array<i32>} : memref<1x8x128xf32, #tpu.memory_space<vmem>>, vector<1x8x128xf32>,
    } else {
    }
    return
  }
  func.func @transform_0(%arg0: i32, %arg1: i32) -> (i32, i32) {
    %c1_i32 = arith.constant 1 : i32
    %0 = arith.muli %arg0, %c1_i32 : i32
    %1 = arith.addi %0, %arg1 : i32
    %c0_i32 = arith.constant 0 : i32
    %c0_i32_0 = arith.constant 0 : i32
    return %1, %c0_i32 : i32, i32
  }
  func.func @transform_1(%arg0: i32, %arg1: i32) -> (i32, i32) {
    %c1_i32 = arith.constant 1 : i32
    %0 = arith.muli %arg0, %c1_i32 : i32
    %1 = arith.addi %0, %arg1 : i32
    %c0_i32 = arith.constant 0 : i32
    %c0_i32_0 = arith.constant 0 : i32
    return %1, %c0_i32 : i32, i32
  }
  func.func @transform_2(%arg0: i32, %arg1: i32) -> (i32, i32, i32) {
    %c0_i32 = arith.constant 0 : i32
    %c0_i32_0 = arith.constant 0 : i32
    %c0_i32_1 = arith.constant 0 : i32
    return %arg0, %c0_i32, %c0_i32_0 : i32, i32, i32
  }
}

</mosaic_0001>

<bundles_post_ra>
// kernel: mse_pallas.1
= control target key start
LH: loop header
LB: loop body
LE: loop exit
PB: predicated region body
PF: predicated region fallthrough
CT: control target
= control target key end

     0   :  { %v82_v0 = vlaneseq  ;;  %v166_v4 = vmov 1983009808   ;;  %vm120_vm0 = vcmask 1041408   ;;  %s205_s0 = inlined_call_operand.vmem [shape: f32[2,1024], index: 0, kind: input, shape index: {}]   ;;  %s206_s1 = inlined_call_operand.vmem [shape: f32[2,1024], index: 1, kind: input, shape index: {}]   ;;  %s207_s2 = inlined_call_operand.vmem [shape: f32[1,8,128], index: 2, kind: output, shape index: {}]  }
   0x1   :  { %v57_v1 = vld [vmem:[%s205_s0] sm:$0xff]  ;;  %v58_v2 = vld [vmem:[%s205_s0 + $0x8] sm:$0xff]  ;;  %v80_v5 = vunpack.c.l.s4 %v166_v4 }
   0x2   :  { %v59_v3 = vld [vmem:[%s206_s1] sm:$0xff]  ;;  %v60_v6 = vld [vmem:[%s206_s1 + $0x8] sm:$0xff]  ;;  %v83_v8 = vshrl.u32 %v82_v0, 7 }
   0x3   :  { %v61_v7 = vsub.f32 %v57_v1, %v59_v3  ;;  %v62_v9 = vsub.f32 %v58_v2, %v60_v6  ;;  %v81_v10 = vunpack.c.0.s8 %v80_v5 }
   0x5   :  { %v63_v11 = vmul.f32 %v61_v7, %v61_v7  ;;  %v64_v12 = vmul.f32 %v62_v9, %v62_v9  ;;  %v84_v13 = vsub.s32 %v81_v10, %v83_v8 }
   0x7   :  { %v78_v14 = vcombine.high %v63_v11, %v63_v11  ;;  %v85_v15 = vrot.slane %v63_v11, %v84_v13  ;;  %v95_v18 = vcombine.high %v64_v12, %v64_v12  ;;  %v102_v19 = vrot.slane %v64_v12, %v84_v13 }
   0x9   :  { %v92_v16 = vrot.slane %v78_v14, %v84_v13  ;;  %v93_v17 = vcombine.high %v85_v15, %v85_v15  ;;  %v121_v20 = vsel %vm120_vm0, %v85_v15, 0.0  ;;  %v109_v25 = vrot.slane %v95_v18, %v84_v13 }
   0xa   :  { %v110_v26 = vcombine.high %v102_v19, %v102_v19  ;;  %v128_v29 = vsel %vm120_vm0, %v102_v19, 0.0 }
   0xb   :  { %v94_v21 = vcombine.high %v92_v16, %v92_v16  ;;  %v122_v22 = vsel %vm120_vm0, %v93_v17, 0.0  ;;  %v124_v23 = vsel %vm120_vm0, %v92_v16, 0.0  ;;  %v111_v31 = vcombine.high %v109_v25, %v109_v25 }
   0xc   :  { %v123_v24 = vadd.f32 %v122_v22, %v121_v20  ;;  %v130_v32 = vsel %vm120_vm0, %v110_v26, 0.0  ;;  %v132_v34 = vsel %vm120_vm0, %v109_v25, 0.0 }
   0xd   :  { %v126_v27 = vsel %vm120_vm0, %v94_v21, 0.0  ;;  %v134_v36 = vsel %vm120_vm0, %v111_v31, 0.0 }
   0xe   :  { %v125_v28 = vadd.f32 %v124_v23, %v123_v24 }
  0x10   :  { %v127_v30 = vadd.f32 %v126_v27, %v125_v28 }
  0x12   :  { %v129_v33 = vadd.f32 %v128_v29, %v127_v30 }
  0x14   :  { %v131_v35 = vadd.f32 %v130_v32, %v129_v33 }
  0x16   :  { %v133_v37 = vadd.f32 %v132_v34, %v131_v35 }
  0x18   :  { %v135_v38 = vadd.f32 %v134_v36, %v133_v37 }
  0x1a   :  { %136 = vadd.xlane.f32.xlu0 %v135_v38 }
  0xa3   :  { %v137_v39 = vpop.xlane.xlu0 %136 }
  0xa4   :  { %v138_v40 = vrot.slane %v137_v39, 4 }
  0xa6   :  { %v139_v41 = vadd.f32 %v138_v40, %v137_v39 }
  0xa8   :  { %v140_v42 = vrot.slane %v139_v41, 2 }
  0xaa   :  { %v141_v43 = vadd.f32 %v140_v42, %v139_v41 }
  0xac   :  { %v142_v44 = vrot.slane %v141_v43, 1 }
  0xae   :  { %v143_v45 = vadd.f32 %v142_v44, %v141_v43 }
  0xb0   :  { %163 = vpush %v143_v45 }
  0xe1   :  { %s164_s0 = spop %163 }
  0xe2   :  { %v145_v46 = vstv %s164_s0 }
  0xe3   :  { %146 = vst [vmem:[%s207_s2] sm:$0xff] %v145_v46 }

</bundles_post_ra>
